<compile_context>
chip_gen: v7x
topology: tpu7x:2x2x1
jax: 0.10.0
libtpu: 0.0.40
codegen_flags: <defaults>
</compile_context>

<pallas_src>
import jax
import jax.numpy as jnp
from jax.experimental import pallas as pl
from jax.experimental.pallas import tpu as pltpu


def qnet_kernel(x_ref, w1_ref, b1_ref, w2_ref, b2_ref, o_ref):
    # fc1: (TB, E) @ (E, H) + (1, H), accumulate in f32 on the MXU.
    h = jnp.dot(x_ref[...], w1_ref[...], preferred_element_type=jnp.float32)
    h = h + b1_ref[...].astype(jnp.float32)
    # ReLU (f32 activation path on all chip generations).
    h = jnp.maximum(h, 0.0)
    # fc2: (TB, H) @ (H, A_pad) + (1, A_pad). Cast only the matmul operand.
    q = jnp.dot(h.astype(w2_ref.dtype), w2_ref[...],
                preferred_element_type=jnp.float32)
    q = q + b2_ref[...].astype(jnp.float32)
    o_ref[...] = q.astype(o_ref.dtype)


def _itemsize(x):
    return jnp.dtype(x.dtype).itemsize


def qnet_forward(state, w1, b1, w2, b2, *, block_batch=512):
    """state: (B, E); w1: (E, H); b1: (1, H); w2: (H, A); b2: (1, A).

    Returns (B, A) Q-values, identical math to the PyTorch QNet.forward.
    """
    B, E = state.shape
    H = w1.shape[1]
    A = w2.shape[1]

    # --- Lane-dense output: pad fc2 columns up to a multiple of 128. -------
    A_pad = max(128, ((A + 127) // 128) * 128)
    if A_pad != A:
        w2p = jnp.zeros((H, A_pad), w2.dtype).at[:, :A].set(w2)
        b2p = jnp.zeros((1, A_pad), b2.dtype).at[:, :A].set(b2)
    else:
        w2p, b2p = w2, b2

    def cost(batch):
        flops = 2 * batch * (E * H + H * A_pad)
        bytes_accessed = (
            batch * E * _itemsize(state)
            + w1.size * _itemsize(w1) + b1.size * _itemsize(b1)
            + w2p.size * _itemsize(w2p) + b2p.size * _itemsize(b2p)
            + batch * A_pad * _itemsize(state))
        return pl.CostEstimate(flops=flops, transcendentals=0,
                               bytes_accessed=bytes_accessed)

    if B <= block_batch:
        # ---- Small batch: single shot, no grid, no pipeline machinery. ----
        out = pl.pallas_call(
            qnet_kernel,
            out_shape=jax.ShapeDtypeStruct((B, A_pad), state.dtype),
            in_specs=[pl.BlockSpec(memory_space=pltpu.MemorySpace.VMEM)] * 5,
            out_specs=pl.BlockSpec(memory_space=pltpu.MemorySpace.VMEM),
            cost_estimate=cost(B),
        )(state, w1, b1, w2p, b2p)
        return out[:, :A]

    # ---- Large batch: grid over batch tiles, weights stay VMEM-resident. --
    TB = block_batch
    num_tiles = pl.cdiv(B, TB)
    B_pad = num_tiles * TB
    if B_pad != B:
        state_p = jnp.zeros((B_pad, E), state.dtype).at[:B].set(state)
    else:
        state_p = state

    out = pl.pallas_call(
        qnet_kernel,
        out_shape=jax.ShapeDtypeStruct((B_pad, A_pad), state.dtype),
        grid=(num_tiles,),
        in_specs=[
            pl.BlockSpec((TB, E), lambda i: (i, 0)),       # state tile
            pl.BlockSpec((E, H), lambda i: (0, 0)),        # w1 (resident)
            pl.BlockSpec((1, H), lambda i: (0, 0)),        # b1 (resident)
            pl.BlockSpec((H, A_pad), lambda i: (0, 0)),    # w2 (resident)
            pl.BlockSpec((1, A_pad), lambda i: (0, 0)),    # b2 (resident)
        ],
        out_specs=pl.BlockSpec((TB, A_pad), lambda i: (i, 0)),
        compiler_params=pltpu.CompilerParams(
            dimension_semantics=("parallel",),             # 2x on v7x dual TC
            vmem_limit_bytes=32 * 1024 * 1024),            # safe on v5e/v6e/v7x
        cost_estimate=cost(B_pad),
    )(state_p, w1, b1, w2p, b2p)
    return out[:B, :A]


def init_qnet_params(key, embed_dim, action_size, dtype=jnp.float32):
    """Deterministic init mirroring nn.Linear's U(-1/sqrt(fan_in), +...)."""
    hidden = embed_dim // 2
    k1, k2, k3, k4 = jax.random.split(key, 4)
    lim1 = 1.0 / jnp.sqrt(embed_dim)
    lim2 = 1.0 / jnp.sqrt(hidden)
    w1 = jax.random.uniform(k1, (embed_dim, hidden), dtype, -lim1, lim1)
    b1 = jax.random.uniform(k2, (1, hidden), dtype, -lim1, lim1)
    w2 = jax.random.uniform(k3, (hidden, action_size), dtype, -lim2, lim2)
    b2 = jax.random.uniform(k4, (1, action_size), dtype, -lim2, lim2)
    return w1, b1, w2, b2


if __name__ == "__main__":
    key = jax.random.PRNGKey(0)
    kp, kx1, kx2 = jax.random.split(key, 3)

    embed_dim = 32        # -> hidden = 16
    action_size = 4
    w1, b1, w2, b2 = init_qnet_params(kp, embed_dim, action_size)

    # Path 1: tiny batch -> gridless single-shot kernel.
    state_small = jax.random.normal(kx1, (8, embed_dim), jnp.float32)
    q_small = jax.block_until_ready(qnet_forward(state_small, w1, b1, w2, b2))
    ref_small = jnp.maximum(state_small @ w1 + b1, 0.0) @ w2 + b2
    assert q_small.shape == (8, action_size)
    assert jnp.allclose(q_small, ref_small, atol=1e-5, rtol=1e-5)

    # Path 2: replay-buffer-sized batch -> batched grid, weights resident,
    # batch axis parallel, lane-dense (padded) output store.
    state_big = jax.random.normal(kx2, (1000, embed_dim), jnp.float32)
    q_big = jax.block_until_ready(
        qnet_forward(state_big, w1, b1, w2, b2, block_batch=256))
    ref_big = jnp.maximum(state_big @ w1 + b1, 0.0) @ w2 + b2
    assert q_big.shape == (1000, action_size)
    assert jnp.allclose(q_big, ref_big, atol=1e-4, rtol=1e-5)

    print("KERNEL_OK")
</pallas_src>

<mosaic_0001>
module attributes {stable_mosaic.version = 11 : i64} {
  func.func @qnet_kernel(%arg0: memref<8x32xf32, #tpu.memory_space<vmem>>, %arg1: memref<32x16xf32, #tpu.memory_space<vmem>>, %arg2: memref<1x16xf32, #tpu.memory_space<vmem>>, %arg3: memref<16x128xf32, #tpu.memory_space<vmem>>, %arg4: memref<1x128xf32, #tpu.memory_space<vmem>>, %arg5: memref<8x128xf32, #tpu.memory_space<vmem>>) attributes {dimension_semantics = [], scalar_prefetch = 0 : i64, scratch_operands = 0 : i64, tpu.core_type = #tpu.core_type<tc>} {
    %c0 = arith.constant 0 : index
    %c0_0 = arith.constant 0 : index
    %0 = vector.load %arg0[%c0, %c0_0] : memref<8x32xf32, #tpu.memory_space<vmem>>, vector<8x32xf32>
    %c0_1 = arith.constant 0 : index
    %c0_2 = arith.constant 0 : index
    %1 = vector.load %arg1[%c0_1, %c0_2] : memref<32x16xf32, #tpu.memory_space<vmem>>, vector<32x16xf32>
    %cst = arith.constant dense<0.000000e+00> : vector<8x16xf32>
    %2 = tpu.matmul %0, %1, %cst {dimension_numbers = #tpu.dot_dimension_numbers<[1], [0], [0], [1], [0, 0, 1, 1], [], []>} : vector<8x32xf32>, vector<32x16xf32>, vector<8x16xf32> -> vector<8x16xf32>
    %c0_3 = arith.constant 0 : index
    %c0_4 = arith.constant 0 : index
    %3 = vector.load %arg2[%c0_3, %c0_4] : memref<1x16xf32, #tpu.memory_space<vmem>>, vector<1x16xf32>
    %4 = vector.broadcast %3 : vector<1x16xf32> to vector<8x16xf32>
    %5 = arith.addf %2, %4 : vector<8x16xf32>
    %cst_5 = arith.constant 0.000000e+00 : f32
    %6 = vector.broadcast %cst_5 : f32 to vector<8x16xf32>
    %7 = arith.maximumf %5, %6 : vector<8x16xf32>
    %c0_6 = arith.constant 0 : index
    %c0_7 = arith.constant 0 : index
    %8 = vector.load %arg3[%c0_6, %c0_7] : memref<16x128xf32, #tpu.memory_space<vmem>>, vector<16x128xf32>
    %cst_8 = arith.constant dense<0.000000e+00> : vector<8x128xf32>
    %9 = tpu.matmul %7, %8, %cst_8 {dimension_numbers = #tpu.dot_dimension_numbers<[1], [0], [0], [1], [0, 0, 1, 1], [], []>} : vector<8x16xf32>, vector<16x128xf32>, vector<8x128xf32> -> vector<8x128xf32>
    %c0_9 = arith.constant 0 : index
    %c0_10 = arith.constant 0 : index
    %10 = vector.load %arg4[%c0_9, %c0_10] : memref<1x128xf32, #tpu.memory_space<vmem>>, vector<1x128xf32>
    %11 = vector.broadcast %10 : vector<1x128xf32> to vector<8x128xf32>
    %12 = arith.addf %9, %11 : vector<8x128xf32>
    %c0_11 = arith.constant 0 : index
    %c0_12 = arith.constant 0 : index
    %13 = vector.load %arg5[%c0_11, %c0_12] : memref<8x128xf32, #tpu.memory_space<vmem>>, vector<8x128xf32>
    tpu.vector_store %arg5[%c0_11, %c0_12], %12 {strides = array<i32>} : memref<8x128xf32, #tpu.memory_space<vmem>>, vector<8x128xf32>,
    return
  }
}

</mosaic_0001>

<bundles_post_ra>
// kernel: tpu_custom_call.1
= control target key start
LH: loop header
LB: loop body
LE: loop exit
PB: predicated region body
PF: predicated region fallthrough
CT: control target
= control target key end

     0   :  { %v273_v3 = vmov 0.0|0.0   ;;  %vm274_vm0 = vmmov 0   ;;  %v275_v6 = vmov 0.0   ;;  %s346_s0 = inlined_call_operand.vmem [shape: f32[8,32], index: 0, kind: input, shape index: {}]   ;;  %s347_s1 = inlined_call_operand.vmem [shape: f32[32,16], index: 1, kind: input, shape index: {}]   ;;  %s348_s2 = inlined_call_operand.vmem [shape: f32[1,16], index: 2, kind: input, shape index: {}]   ;;  %s349_s3 = inlined_call_operand.vmem [shape: f32[16,128], index: 3, kind: input, shape index: {}]   ;;  %s350_s4 = inlined_call_operand.vmem [shape: f32[1,128], index: 4, kind: input, shape index: {}]   ;;  %s351_s5 = inlined_call_operand.hbm [shape: f32[8,128], index: 5, kind: output, shape index: {}]  }
   0x1   :  { %v22_v0 = vld [vmem:[%s347_s1] sm:$0xff]  ;;  %v23_v1 = vld [vmem:[%s347_s1 + $0x8] sm:$0xff]  ;;  %v24_v2 = vld [vmem:[%s347_s1 + $0x10] sm:$0xff]  ;;  %236 = vmatprep.subr.bf16.mxu0 %v273_v3  ;;  %226 = vmatprep.mubr.msk.f32.mxu0 %vm274_vm0, %v275_v6 }
   0x2   :  { %v237_v4 = vpack.c.bf16 %v23_v1, %v22_v0  ;;  %v25_v5 = vld [vmem:[%s347_s1 + $0x18] sm:$0xff]  ;;  %242 = vmatprep.subr.bf16.mxu1 %v273_v3  ;;  %233 = vmatprep.mubr.msk.f32.mxu1 %vm274_vm0, %v275_v6 }
   0x3   :  { %10 = vsyncpa [#allocation3], 0  ;;  %v240_v7 = vpack.c.bf16 %v25_v5, %v24_v2  ;;  %v21_v8 = vld [vmem:[%s346_s0] sm:$0xff]  ;;  %vm33_vm1 = vcmask 261120   ;;  %v109_v10 = vld [vmem:[%s349_s3 + $0x8] sm:$0xff]  ;;  %vm117_vm2 = vcmask 130048  }
   0x4   :  { %238 = vmatpush3.bf16.msra.mxu0 %v237_v4  ;;  %v108_v9 = vld [vmem:[%s349_s3] sm:$0xff]  ;;  %s276_s9 = smov [#allocation2]  }
   0x5   :  { %239 = vmatprep.subr.bf16.mxu0 %v273_v3  ;;  %v243_v11 = vpack.c.bf16 %v109_v10, %v108_v9  ;;  %v206_v12 = vld [vmem:[%s348_s2] ss:$0 sm:$0xff]  ;;  %s198_s10 = sshll.u32 %s276_s9, 4  ;;  %s199_s10 = int_to_ptr.vmem [resolvable:$true] %s198_s10 }
   0x6   :  { %v208_v17 = vld [vmem:[%s350_s4] ss:$0 sm:$0xff]  ;;  %s249_s3 = scalar_lea.vmem %s199_s10, 128  ;;  %p254_p1 = scmp.lt.s32.totalorder %s199_s10, %s199_s10 }
   0x7   :  { %244 = vmatpush3.bf16.msra.mxu1 %v243_v11  ;;  %p250_p0 = scmp.ne.s32.totalorder %s199_s10, %s249_s3  ;;  %p255_p2 = scmp.lt.s32.totalorder %s249_s3, %s249_s3 }
   0x8   :  { %241 = vmatpush3.bf16.msra.mxu0 %v240_v7 }
   0x9   :  { %p256_p3 = por %p255_p2, %p254_p1 }
   0xb   :  { %227 = vmatmul.mubr.msk.f32.vlgmr.msra.gmra.mrb[0].mxu0 %vm33_vm1, %v21_v8  ;;  %p257_p4 = pnand %p256_p3, %p250_p0 }
  0xde   :  { %v103_v13 = vpop.f32.mrb[0].mxu0 }
  0xdf   :  { %v104_v14 = vadd.f32 %v206_v12, %v103_v13  ;;  %v228_v15 = vpop.f32.mrb[1].mxu0 }
  0xe1   :  { %v107_v16 = vmax.f32 %v104_v14, 0.0 }
  0xe3   :  { %234 = vmatmul.mubr.msk.f32.vlgmr.msra.gmra.mrb[0].mxu1 %vm117_vm2, %v107_v16 }
 0x1b6   :  { %v187_v18 = vpop.f32.mrb[0].mxu1 }
 0x1b7   :  { %v188_v19 = vadd.f32 %v208_v17, %v187_v18  ;;  %v235_v20 = vpop.f32.mrb[1].mxu1 }
 0x1b9   :  { %191 = vst [vmem:[#allocation2] sm:$0xff] %v188_v19 }
 0x1ba   :  { %260 = shalt.err (!%p257_p4)
}
 0x1bb   :  { %s261_s12 = scalar_lea.hbm %s351_s5, 128 }
 0x1bc   :  { %p262_p5 = scmp.ne.s32.totalorder %s351_s5, %s261_s12  ;;  %p265_p6 = scmp.lt.u32.totalorder %s261_s12, %s351_s5 }
 0x1be   :  { %p267_p7 = pnand %p265_p6, %p262_p5 }
 0x1c0   :  { %270 = shalt.err (!%p267_p7)
}
 0x1c1   :  { %201 = dma.vmem_to_hbm [thread:$0]  %s199_s10, 128, %s351_s5, [#allocation3]  }
 0x1c2   :  { %271 = dma.done.wait [#allocation3], 128  }
 0x1c3   :  { %272 = vsyncadd [#allocation3], 4294967168 }
 0x1c4   :  { %205 = vsyncpa [#allocation3], 1 }

</bundles_post_ra>
